<compile_context>
chip_gen: v7x
topology: tpu7x:2x2x1
jax: 0.10.0
libtpu: 0.0.40
codegen_flags: <defaults>
</compile_context>

<pallas_src>
import functools

import jax
import jax.numpy as jnp
from jax import lax
from jax.experimental import pallas as pl
from jax.experimental.pallas import tpu as pltpu


def _l2_normalize(v, eps=1e-12):
    # matches torch.nn.functional.normalize(v, dim=1): v / max(||v||_2, eps)
    nrm = jnp.sqrt(jnp.sum(v * v, axis=1, keepdims=True))
    return v / jnp.maximum(nrm, eps)


# ----------------------------------------------------------------------------
# Pass 2 / inference kernel: score + softmax + readout for one n-tile.
# ----------------------------------------------------------------------------
def _readout_kernel(x_ref, m_ref, out_ref, score_ref, *, matmul_dtype):
    x = x_ref[...].astype(jnp.float32)          # (tn, c)
    m = m_ref[...].astype(jnp.float32)          # (k, c)

    xn = _l2_normalize(x)
    mn = _l2_normalize(m)

    # score = xn @ mn.T  (contract over c); bf16 operands, f32 accumulation.
    score = lax.dot_general(
        xn.astype(matmul_dtype), mn.astype(matmul_dtype),
        (((1,), (1,)), ((), ())), preferred_element_type=jnp.float32)   # (tn, k)

    # softmax over k: elementwise math stays f32, reciprocal goes to the EUP.
    s_max = jnp.max(score, axis=1, keepdims=True)
    p = jnp.exp(score - s_max)
    soft = p * pl.reciprocal(jnp.sum(p, axis=1, keepdims=True), approx=True)

    # out = soft_label @ m
    out = lax.dot_general(
        soft.astype(matmul_dtype), m.astype(matmul_dtype),
        (((1,), (0,)), ((), ())), preferred_element_type=jnp.float32)   # (tn, c)

    out_ref[...] = out.astype(out_ref.dtype)
    score_ref[...] = score.astype(score_ref.dtype)


# ----------------------------------------------------------------------------
# Pass 1 kernel: accumulate onehot^T @ x and per-slot counts over the n grid,
# finalize the EMA memory update at the last grid step.
# ----------------------------------------------------------------------------
def _update_kernel(x_ref, m_ref, new_m_ref, sum_ref, cnt_ref,
                   *, n, moving_average_rate, matmul_dtype):
    i = pl.program_id(0)
    tn = x_ref.shape[0]
    k, c = m_ref.shape

    @pl.when(i == 0)
    def _init():
        sum_ref[...] = jnp.zeros_like(sum_ref)
        cnt_ref[...] = jnp.zeros_like(cnt_ref)

    x = x_ref[...].astype(jnp.float32)          # (tn, c)
    m = m_ref[...].astype(jnp.float32)          # (k, c)

    # Mask rows past n (ragged last tile): OOB VMEM reads are garbage and must
    # not pollute the reduction.
    row = i * tn + lax.broadcasted_iota(jnp.int32, (tn, 1), 0)
    valid = row < n                              # (tn, 1) bool
    x = jnp.where(valid, x, 0.0)

    xn = _l2_normalize(x)
    mn = _l2_normalize(m)
    score = lax.dot_general(
        xn.astype(matmul_dtype), mn.astype(matmul_dtype),
        (((1,), (1,)), ((), ())), preferred_element_type=jnp.float32)   # (tn, k)

    # First-index argmax over k -> one-hot; invalid rows contribute nothing.
    col = lax.broadcasted_iota(jnp.int32, (tn, k), 1)
    mx = jnp.max(score, axis=1, keepdims=True)
    first_max = jnp.min(jnp.where(score == mx, col, k), axis=1, keepdims=True)
    onehot = jnp.where((col == first_max) & valid, 1.0, 0.0).astype(jnp.float32)

    # embed_sum^T accumulation: onehot^T @ x (contract over the tile rows).
    sum_ref[...] += lax.dot_general(
        onehot.astype(matmul_dtype), x.astype(matmul_dtype),
        (((0,), (0,)), ((), ())), preferred_element_type=jnp.float32)   # (k, c)
    # Per-slot counts: sublane reduction (XLU slot), not a lane-width-1 matmul.
    cnt_ref[...] += jnp.sum(onehot, axis=0, keepdims=True)              # (1, k)

    @pl.when(i == pl.num_programs(0) - 1)
    def _finalize():
        # Turn the (1, k) counts row into a (k, 1) column with a broadcast +
        # diagonal mask + lane reduce (no XLU transpose, no extra MXU op).
        ri = lax.broadcasted_iota(jnp.int32, (k, k), 0)
        ci = lax.broadcasted_iota(jnp.int32, (k, k), 1)
        cnt_bcast = jnp.broadcast_to(cnt_ref[...], (k, k))
        counts = jnp.sum(jnp.where(ri == ci, cnt_bcast, 0.0),
                         axis=1, keepdims=True)                          # (k, 1)
        embed_mean_t = sum_ref[...] / (counts + 1e-6)                    # (k, c)
        new_m = (m * moving_average_rate
                 + embed_mean_t * (1.0 - moving_average_rate))
        new_m_ref[...] = new_m.astype(new_m_ref.dtype)


# ----------------------------------------------------------------------------
# Wrapper
# ----------------------------------------------------------------------------
def _round_up(a, b):
    return (a + b - 1) // b * b


def _pick_block_n(n, c, k, budget_bytes=8 * 1024 * 1024):
    """Rows per tile: double-buffered f32 x/out/score tiles kept well inside
    the scoped-VMEM default on every TPU generation (incl. v7x)."""
    per_row = 2 * 4 * (2 * c + k)                # 2 buffers * f32 * (x + out + score)
    bn = max(8, min(budget_bytes // max(per_row, 1), 1024, _round_up(n, 8)))
    return max(8, (bn // 8) * 8)


def memory_block_forward(x, m, *, update_flag=True, moving_average_rate=0.999,
                         block_n=None, matmul_dtype=jnp.bfloat16):
    """Memory_Block.forward.  x: (n, c), m: (k, c).
    Returns (out (n, c), score (n, k), new_m (k, c))."""
    n, c = x.shape
    k, c2 = m.shape
    assert c == c2
    if block_n is None:
        block_n = _pick_block_n(n, c, k)
    block_n = max(8, _round_up(int(block_n), 8))
    grid = (pl.cdiv(n, block_n),)

    x_spec = pl.BlockSpec((block_n, c), lambda i: (i, 0))
    m_spec = pl.BlockSpec((k, c), lambda i: (0, 0))        # resident across the grid

    new_m = m
    if update_flag:
        update = pl.pallas_call(
            functools.partial(_update_kernel, n=n,
                              moving_average_rate=float(moving_average_rate),
                              matmul_dtype=matmul_dtype),
            out_shape=jax.ShapeDtypeStruct((k, c), m.dtype),
            grid=grid,
            in_specs=[x_spec, m_spec],
            out_specs=pl.BlockSpec((k, c), lambda i: (0, 0)),
            scratch_shapes=[pltpu.VMEM((k, c), jnp.float32),
                            pltpu.VMEM((1, k), jnp.float32)],
            input_output_aliases={1: 0},                   # new_m reuses m's HBM buffer
            compiler_params=pltpu.CompilerParams(
                dimension_semantics=("arbitrary",)),       # reduction over n
        )
        new_m = update(x, m)

    readout = pl.pallas_call(
        functools.partial(_readout_kernel, matmul_dtype=matmul_dtype),
        out_shape=(jax.ShapeDtypeStruct((n, c), x.dtype),
                   jax.ShapeDtypeStruct((n, k), x.dtype)),
        grid=grid,
        in_specs=[x_spec, m_spec],
        out_specs=(pl.BlockSpec((block_n, c), lambda i: (i, 0)),
                   pl.BlockSpec((block_n, k), lambda i: (i, 0))),
        compiler_params=pltpu.CompilerParams(
            dimension_semantics=("parallel",)),            # v7x: rows split across TCs
    )
    out, score = readout(x, new_m)
    return out, score, new_m


# ----------------------------------------------------------------------------
# Pure-JAX reference mirroring the PyTorch module.
# ----------------------------------------------------------------------------
def memory_block_reference(x, m, *, update_flag=True, moving_average_rate=0.999):
    xn = _l2_normalize(x)
    mn = _l2_normalize(m)
    score = xn @ mn.T
    new_m = m
    if update_flag:
        k = m.shape[0]
        embed_ind = jnp.argmax(score, axis=1)
        onehot = jax.nn.one_hot(embed_ind, k, dtype=x.dtype)       # (n, k)
        onehot_sum = onehot.sum(0)                                 # (k,)
        embed_sum = x.T @ onehot                                   # (c, k)
        embed_mean = embed_sum / (onehot_sum + 1e-6)
        new_m = m * moving_average_rate + embed_mean.T * (1 - moving_average_rate)
        mn = _l2_normalize(new_m)
        score = xn @ mn.T
    soft = jax.nn.softmax(score, axis=1)
    out = soft @ new_m
    return out, score, new_m


if __name__ == "__main__":
    # Module config: hdim=32, kdim=16 (nn.Embedding(kdim, hdim) -> weight (k, c)).
    # n chosen so the n-grid has multiple tiles (block_n=128 -> grid=(2,)).
    n, hdim, kdim = 256, 32, 16
    key = jax.random.PRNGKey(0)
    kx, km = jax.random.split(key)
    x = jax.random.normal(kx, (n, hdim), dtype=jnp.float32)
    m = jax.random.normal(km, (kdim, hdim), dtype=jnp.float32)   # nn.Embedding ~ N(0,1)

    # References (computed before the aliasing call, which may donate m's buffer).
    out_r, score_r, new_m_r = memory_block_reference(x, m, update_flag=True)
    out2_r, score2_r, _ = memory_block_reference(x, m, update_flag=False)

    # Inference path (no memory update).
    out2, score2, m_same = memory_block_forward(x, m, update_flag=False, block_n=128)
    jax.block_until_ready((out2, score2))
    assert jnp.allclose(score2, score2_r, atol=3e-2, rtol=1e-2), "score mismatch (no update)"
    assert jnp.allclose(out2, out2_r, atol=1e-1, rtol=2e-2), "out mismatch (no update)"

    # Training path (EMA memory update; updated memory is returned / aliased).
    out, score, new_m = memory_block_forward(x, m, update_flag=True,
                                             moving_average_rate=0.999, block_n=128)
    jax.block_until_ready((out, score, new_m))
    assert out.shape == (n, hdim) and score.shape == (n, kdim) and new_m.shape == (kdim, hdim)
    assert jnp.allclose(new_m, new_m_r, atol=1e-2, rtol=1e-2), "new_m mismatch"
    assert jnp.allclose(score, score_r, atol=3e-2, rtol=1e-2), "score mismatch"
    assert jnp.allclose(out, out_r, atol=1e-1, rtol=2e-2), "out mismatch"

    print("KERNEL_OK")
</pallas_src>

<mosaic_0001>
module attributes {stable_mosaic.version = 11 : i64} {
  func.func @_readout_kernel(%arg0: i32, %arg1: memref<128x32xf32, #tpu.memory_space<vmem>>, %arg2: memref<16x32xf32, #tpu.memory_space<vmem>>, %arg3: memref<128x32xf32, #tpu.memory_space<vmem>>, %arg4: memref<128x16xf32, #tpu.memory_space<vmem>>) attributes {dimension_semantics = [#tpu.dimension_semantics<parallel>], iteration_bounds = array<i64: 2>, scalar_prefetch = 0 : i64, scratch_operands = 0 : i64, tpu.core_type = #tpu.core_type<tc>, window_params = [{transform_indices = @transform_0, window_bounds = array<i64: 128, 32>}, {pipeline_mode = #tpu.pipeline_mode<synchronous>, transform_indices = @transform_1, window_bounds = array<i64: 16, 32>}, {transform_indices = @transform_2, window_bounds = array<i64: 128, 32>}, {transform_indices = @transform_3, window_bounds = array<i64: 128, 16>}]} {
    %c0 = arith.constant 0 : index
    %c0_0 = arith.constant 0 : index
    %0 = vector.load %arg1[%c0, %c0_0] : memref<128x32xf32, #tpu.memory_space<vmem>>, vector<128x32xf32>
    %c0_1 = arith.constant 0 : index
    %c0_2 = arith.constant 0 : index
    %1 = vector.load %arg2[%c0_1, %c0_2] : memref<16x32xf32, #tpu.memory_space<vmem>>, vector<16x32xf32>
    %2 = arith.mulf %0, %0 : vector<128x32xf32>
    %cst = arith.constant dense<0.000000e+00> : vector<128xf32>
    %3 = vector.multi_reduction <add>, %2, %cst [1] : vector<128x32xf32> to vector<128xf32>
    %4 = vector.shape_cast %3 : vector<128xf32> to vector<128x1xf32>
    %5 = math.sqrt %4 : vector<128x1xf32>
    %cst_3 = arith.constant 9.99999996E-13 : f32
    %6 = vector.broadcast %cst_3 : f32 to vector<128x1xf32>
    %7 = arith.maximumf %5, %6 : vector<128x1xf32>
    %8 = vector.broadcast %7 : vector<128x1xf32> to vector<128x32xf32>
    %9 = arith.divf %0, %8 : vector<128x32xf32>
    %10 = arith.mulf %1, %1 : vector<16x32xf32>
    %cst_4 = arith.constant dense<0.000000e+00> : vector<16xf32>
    %11 = vector.multi_reduction <add>, %10, %cst_4 [1] : vector<16x32xf32> to vector<16xf32>
    %12 = vector.shape_cast %11 : vector<16xf32> to vector<16x1xf32>
    %13 = math.sqrt %12 : vector<16x1xf32>
    %cst_5 = arith.constant 9.99999996E-13 : f32
    %14 = vector.broadcast %cst_5 : f32 to vector<16x1xf32>
    %15 = arith.maximumf %13, %14 : vector<16x1xf32>
    %16 = vector.broadcast %15 : vector<16x1xf32> to vector<16x32xf32>
    %17 = arith.divf %1, %16 : vector<16x32xf32>
    %18 = arith.truncf %9 : vector<128x32xf32> to vector<128x32xbf16>
    %19 = arith.truncf %17 : vector<16x32xf32> to vector<16x32xbf16>
    %cst_6 = arith.constant dense<0.000000e+00> : vector<128x16xf32>
    %20 = tpu.matmul %18, %19, %cst_6 {dimension_numbers = #tpu.dot_dimension_numbers<[1], [1], [0], [0], [0, 0, 1, 0], [], []>} : vector<128x32xbf16>, vector<16x32xbf16>, vector<128x16xf32> -> vector<128x16xf32>
    %cst_7 = arith.constant dense<0xFF800000> : vector<128xf32>
    %21 = vector.multi_reduction <maximumf>, %20, %cst_7 [1] : vector<128x16xf32> to vector<128xf32>
    %22 = vector.shape_cast %21 : vector<128xf32> to vector<128x1xf32>
    %23 = vector.broadcast %22 : vector<128x1xf32> to vector<128x16xf32>
    %24 = arith.subf %20, %23 : vector<128x16xf32>
    %25 = math.exp %24 : vector<128x16xf32>
    %cst_8 = arith.constant dense<0.000000e+00> : vector<128xf32>
    %26 = vector.multi_reduction <add>, %25, %cst_8 [1] : vector<128x16xf32> to vector<128xf32>
    %27 = vector.shape_cast %26 : vector<128xf32> to vector<128x1xf32>
    %28 = tpu.reciprocal %27 {approx = true} : vector<128x1xf32> -> vector<128x1xf32>
    %29 = vector.broadcast %28 : vector<128x1xf32> to vector<128x16xf32>
    %30 = arith.mulf %25, %29 : vector<128x16xf32>
    %31 = arith.truncf %30 : vector<128x16xf32> to vector<128x16xbf16>
    %32 = arith.truncf %1 : vector<16x32xf32> to vector<16x32xbf16>
    %cst_9 = arith.constant dense<0.000000e+00> : vector<128x32xf32>
    %33 = tpu.matmul %31, %32, %cst_9 {dimension_numbers = #tpu.dot_dimension_numbers<[1], [0], [0], [1], [0, 0, 1, 1], [], []>} : vector<128x16xbf16>, vector<16x32xbf16>, vector<128x32xf32> -> vector<128x32xf32>
    %c0_10 = arith.constant 0 : index
    %c0_11 = arith.constant 0 : index
    %34 = vector.load %arg3[%c0_10, %c0_11] : memref<128x32xf32, #tpu.memory_space<vmem>>, vector<128x32xf32>
    tpu.vector_store %arg3[%c0_10, %c0_11], %33 {strides = array<i32>} : memref<128x32xf32, #tpu.memory_space<vmem>>, vector<128x32xf32>,
    %c0_12 = arith.constant 0 : index
    %c0_13 = arith.constant 0 : index
    %35 = vector.load %arg4[%c0_12, %c0_13] : memref<128x16xf32, #tpu.memory_space<vmem>>, vector<128x16xf32>
    tpu.vector_store %arg4[%c0_12, %c0_13], %20 {strides = array<i32>} : memref<128x16xf32, #tpu.memory_space<vmem>>, vector<128x16xf32>,
    return
  }
  func.func @transform_0(%arg0: i32) -> (i32, i32) {
    %c0_i32 = arith.constant 0 : i32
    %c0_i32_0 = arith.constant 0 : i32
    return %arg0, %c0_i32 : i32, i32
  }
  func.func @transform_1(%arg0: i32) -> (i32, i32) {
    %c0_i32 = arith.constant 0 : i32
    %c0_i32_0 = arith.constant 0 : i32
    %c0_i32_1 = arith.constant 0 : i32
    return %c0_i32, %c0_i32_0 : i32, i32
  }
  func.func @transform_2(%arg0: i32) -> (i32, i32) {
    %c0_i32 = arith.constant 0 : i32
    %c0_i32_0 = arith.constant 0 : i32
    return %arg0, %c0_i32 : i32, i32
  }
  func.func @transform_3(%arg0: i32) -> (i32, i32) {
    %c0_i32 = arith.constant 0 : i32
    %c0_i32_0 = arith.constant 0 : i32
    return %arg0, %c0_i32 : i32, i32
  }
}

</mosaic_0001>

<bundles_post_ra>
// kernel: tpu_custom_call.1
= control target key start
LH: loop header
LB: loop body
LE: loop exit
PB: predicated region body
PF: predicated region fallthrough
CT: control target
= control target key end

     0   :  { %s1278_s12 = smov 0   ;;  %s1870_s0 = inlined_call_operand.vmem [shape: f32[256,32], index: 0, kind: input, shape index: {}]   ;;  %s1871_s1 = inlined_call_operand.vmem [shape: f32[16,32], index: 1, kind: input, shape index: {}]   ;;  %s1872_s2 = inlined_call_operand.vmem [shape: f32[256,32], index: 2, kind: output, shape index: {0}]   ;;  %s1873_s3 = inlined_call_operand.vmem [shape: f32[256,16], index: 3, kind: output, shape index: {1}]  }
   0x1 LB: > { %s1022_s13 = sadd.s32 4294967295, %s1256_s12   ;;  %p1026_p0 = scmp.ge.s32.totalorder %s1256_s12, 1  ;;  %s1256_s12 = sphi %s1278_s12, %s14_s12  }
   0x2   : > { %p141_p1 = scmp.lt.s32.totalorder %s1256_s12, 3 }
   0x4   : > { %p142_p2 = pnand %p1026_p0, %p141_p1 }
   0x5   : > { %v1289_v0 = vld [vmem:[%s1871_s1] sm:$0xff] (!%p142_p2)  ;;  %vm223_vm0 = vcmask (!%p142_p2), 261120   ;;  %v1294_v1 = vld [vmem:[%s1871_s1 + $0x8] sm:$0xff] (!%p142_p2)  ;;  %s1027_s18 = sshll.u32 (!%p142_p2), %s1022_s13, 4 }
   0x6   : > { %145 = sbr.rel (%p142_p2) target bundleno = 992 (0x3e0), region = 28  ;;  %v432_v2 = vmul.f32 (!%p142_p2), %v1289_v0, %v1289_v0  ;;  %v433_v3 = vmul.f32 (!%p142_p2), %v1294_v1, %v1294_v1  ;;  %p171_p3 = scmp.lt.s32.totalorder (!%p142_p2), %s1027_s18, 31 }
   0x8   : > { %v434_v4 = vsel (!%p142_p2), %vm223_vm0, %v432_v2, 0.0  ;;  %v437_v5 = vsel (!%p142_p2), %vm223_vm0, %v433_v3, 0.0 }
   0x9   : > { %435 = vadd.xlane.f32.xlu0 (!%p142_p2), %v434_v4 }
   0xd   : > { %s1875_s18 = smov (!%p171_p3, %s1027_s18), 31  ;;  %438 = vadd.xlane.f32.xlu0 %v437_v5 }
   0xe   : > { %s1302_s19 = sshll.u32 %s1875_s18, 3 }
   0xf   : > { %s1308_s22 = scalar_lea.vmem %s1870_s0, %s1302_s19  ;;  %s1609_s25 = scalar_lea.vmem %s1873_s3, %s1302_s19 }
  0x10   : > { %v1311_v6 = vld [vmem:[%s1308_s22] sm:$0xff]  ;;  %v1314_v7 = vld [vmem:[%s1308_s22 + $0x10] sm:$0xff]  ;;  %v1317_v8 = vld [vmem:[%s1308_s22 + $0x8] sm:$0xff]  ;;  %s1833_s28 = scalar_lea.vmem %s1872_s2, %s1302_s19 }
  0x11   : > { %v207_v9 = vmul.f32 %v1311_v6, %v1311_v6  ;;  %v209_v10 = vmul.f32 %v1314_v7, %v1314_v7  ;;  %v208_v11 = vmul.f32 %v1317_v8, %v1317_v8  ;;  %v1326_v12 = vld [vmem:[%s1308_s22 + $0x20] sm:$0xff]  ;;  %v1331_v14 = vld [vmem:[%s1308_s22 + $0x18] sm:$0xff]  ;;  %v1336_v17 = vld [vmem:[%s1308_s22 + $0x30] sm:$0xff] }
  0x12   : > { %v211_v13 = vmul.f32 %v1326_v12, %v1326_v12  ;;  %v210_v19 = vmul.f32 %v1331_v14, %v1331_v14  ;;  %v213_v21 = vmul.f32 %v1336_v17, %v1336_v17  ;;  %v1345_v22 = vld [vmem:[%s1308_s22 + $0x28] sm:$0xff]  ;;  %v1348_v23 = vld [vmem:[%s1308_s22 + $0x40] sm:$0xff]  ;;  %v1357_v28 = vld [vmem:[%s1308_s22 + $0x38] sm:$0xff] }
  0x13   : > { %v224_v15 = vsel %vm223_vm0, %v207_v9, 0.0  ;;  %v230_v16 = vsel %vm223_vm0, %v209_v10, 0.0  ;;  %v227_v18 = vsel %vm223_vm0, %v208_v11, 0.0  ;;  %v212_v25 = vmul.f32 %v1345_v22, %v1345_v22  ;;  %v1360_v29 = vld [vmem:[%s1308_s22 + $0x50] sm:$0xff]  ;;  %v1369_v34 = vld [vmem:[%s1308_s22 + $0x48] sm:$0xff]  ;;  %v1372_v35 = vld [vmem:[%s1308_s22 + $0x60] sm:$0xff] }
  0x14   : > { %225 = vadd.xlane.f32.xlu1 %v224_v15  ;;  %231 = vadd.xlane.f32.xlu0 %v230_v16  ;;  %v236_v20 = vsel %vm223_vm0, %v211_v13, 0.0  ;;  %v233_v24 = vsel %vm223_vm0, %v210_v19, 0.0  ;;  %v242_v26 = vsel %vm223_vm0, %v213_v21, 0.0  ;;  %v215_v27 = vmul.f32 %v1348_v23, %v1348_v23  ;;  %v1381_v40 = vld [vmem:[%s1308_s22 + $0x58] sm:$0xff]  ;;  %v1384_v41 = vld [vmem:[%s1308_s22 + $0x70] sm:$0xff]  ;;  %v1393_v46 = vld [vmem:[%s1308_s22 + $0x68] sm:$0xff] }
  0x15   : > { %v239_v30 = vsel %vm223_vm0, %v212_v25, 0.0  ;;  %v214_v31 = vmul.f32 %v1357_v28, %v1357_v28  ;;  %v217_v33 = vmul.f32 %v1360_v29, %v1360_v29  ;;  %v216_v37 = vmul.f32 %v1369_v34, %v1369_v34  ;;  %v1400_v50 = vld [vmem:[%s1308_s22 + $0x78] sm:$0xff] }
  0x16   : > { %v248_v32 = vsel %vm223_vm0, %v215_v27, 0.0  ;;  %v219_v39 = vmul.f32 %v1372_v35, %v1372_v35  ;;  %v218_v43 = vmul.f32 %v1381_v40, %v1381_v40  ;;  %v221_v45 = vmul.f32 %v1384_v41, %v1384_v41 }
  0x17   : > { %v245_v36 = vsel %vm223_vm0, %v214_v31, 0.0  ;;  %v254_v38 = vsel %vm223_vm0, %v217_v33, 0.0  ;;  %v251_v42 = vsel %vm223_vm0, %v216_v37, 0.0  ;;  %v220_v48 = vmul.f32 %v1393_v46, %v1393_v46 }
  0x18   : > { %228 = vadd.xlane.f32.xlu1 %v227_v18  ;;  %237 = vadd.xlane.f32.xlu0 %v236_v20  ;;  %v260_v44 = vsel %vm223_vm0, %v219_v39, 0.0  ;;  %v257_v47 = vsel %vm223_vm0, %v218_v43, 0.0  ;;  %v266_v49 = vsel %vm223_vm0, %v221_v45, 0.0  ;;  %v222_v52 = vmul.f32 %v1400_v50, %v1400_v50 }
  0x19   : > { %v263_v51 = vsel %vm223_vm0, %v220_v48, 0.0 }
  0x1a   : > { %v269_v53 = vsel %vm223_vm0, %v222_v52, 0.0 }
  0x1c   : > { %234 = vadd.xlane.f32.xlu1 %v233_v24  ;;  %243 = vadd.xlane.f32.xlu0 %v242_v26 }
  0x20   : > { %240 = vadd.xlane.f32.xlu1 %v239_v30  ;;  %249 = vadd.xlane.f32.xlu0 %v248_v32 }
  0x24   : > { %246 = vadd.xlane.f32.xlu1 %v245_v36  ;;  %255 = vadd.xlane.f32.xlu0 %v254_v38 }
  0x28   : > { %252 = vadd.xlane.f32.xlu1 %v251_v42  ;;  %261 = vadd.xlane.f32.xlu0 %v260_v44 }
  0x2c   : > { %258 = vadd.xlane.f32.xlu1 %v257_v47  ;;  %267 = vadd.xlane.f32.xlu0 %v266_v49 }
  0x30   : > { %264 = vadd.xlane.f32.xlu1 %v263_v51 }
  0x34   : > { %270 = vadd.xlane.f32.xlu1 %v269_v53 }
  0x96   : > { %v436_v54 = vpop.xlane.xlu0 %435 }
  0x97   : > { %1114 = vrsqrt.f32 %v436_v54  ;;  %vm442_vm1 = vcmp.eq.f32.partialorder %v436_v54, inf  ;;  %vm444_vm2 = vcmp.eq.f32.partialorder %v436_v54, 0.0  ;;  %v445_v10 = vand.u32 2147483648, %v436_v54 }
  0x9a   : > { %v1406_v55 = vpop.xlane.xlu0 %438 }
  0x9b   : > { %vm449_vm3 = vcmp.eq.f32.partialorder %v1406_v55, inf  ;;  %vm451_vm4 = vcmp.eq.f32.partialorder %v1406_v55, 0.0  ;;  %v452_v18 = vand.u32 2147483648, %v1406_v55 }
  0xa1   : > { %v1408_v56 = vpop.xlane.xlu1 %225  ;;  %v1410_v57 = vpop.xlane.xlu0 %231 }
  0xa2   : > { %1116 = vrsqrt.f32 %v1410_v57  ;;  %v1115_v62 = vpop.eup %1114  ;;  %vm274_vm5 = vcmp.eq.f32.partialorder %v1408_v56, inf  ;;  %v277_v19 = vand.u32 2147483648, %v1408_v56  ;;  %vm276_vm6 = vcmp.eq.f32.partialorder %v1408_v56, 0.0 }
  0xa3   : > { %1118 = vrsqrt.f32 %v1406_v55  ;;  %v441_v3 = vmul.f32 %v1115_v62, %v436_v54  ;;  %vm288_vm7 = vcmp.eq.f32.partialorder %v1410_v57, inf  ;;  %vm290_vm8 = vcmp.eq.f32.partialorder %v1410_v57, 0.0 }
  0xa4   : > { %v291_v30 = vand.u32 2147483648, %v1410_v57 }
  0xa5   : > { %v1412_v58 = vpop.xlane.xlu1 %228  ;;  %v1414_v59 = vpop.xlane.xlu0 %237  ;;  %v443_v13 = vsel %vm442_vm1, %v436_v54, %v441_v3 }
  0xa6   : > { %v446_v27 = vsel %vm444_vm2, %v445_v10, %v443_v13  ;;  %vm281_vm9 = vcmp.eq.f32.partialorder %v1412_v58, inf  ;;  %vm283_vm10 = vcmp.eq.f32.partialorder %v1412_v58, 0.0  ;;  %v284_v37 = vand.u32 2147483648, %v1412_v58 }
  0xa7   : > { %vm302_vm12 = vcmp.eq.f32.partialorder %v1414_v59, inf  ;;  %v454_v43 = vmax.f32 %v446_v27, 1e-12  ;;  %vm304_vm13 = vcmp.eq.f32.partialorder %v1414_v59, 0.0  ;;  %v305_v49 = vand.u32 2147483648, %v1414_v59 }
  0xa9   : > { %v1418_v60 = vpop.xlane.xlu1 %234  ;;  %v1421_v61 = vpop.xlane.xlu0 %243 }
  0xaa   : > { %1120 = vrsqrt.f32 %v1418_v60  ;;  %vm295_vm11 = vcmp.eq.f32.partialorder %v1418_v60, inf  ;;  %v298_v47 = vand.u32 2147483648, %v1418_v60  ;;  %vm297_vm14 = vcmp.eq.f32.partialorder %v1418_v60, 0.0 }
  0xab   : > { %1122 = vrsqrt.f32 %v1408_v56  ;;  %vm316_vm1 = vcmp.eq.f32.partialorder %v1421_v61, inf  ;;  %vm318_vm2 = vcmp.eq.f32.partialorder %v1421_v61, 0.0 }
  0xac   : > { %1124 = vrsqrt.f32 %v1412_v58  ;;  %v1117_v4 = vpop.eup %1116 }
  0xad   : > { %v1425_v63 = vpop.xlane.xlu1 %240  ;;  %v1429_v2 = vpop.xlane.xlu0 %249  ;;  %v287_v15 = vmul.f32 %v1117_v4, %v1410_v57 }
  0xae   : > { %1126 = vrsqrt.f32 %v1425_v63  ;;  %v1119_v9 = vpop.eup %1118  ;;  %vm309_vm15 = vcmp.eq.f32.partialorder %v1425_v63, inf  ;;  %v312_v13 = vand.u32 2147483648, %v1425_v63 }
  0xaf   : > { %1128 = vrsqrt.f32 %v1414_v59  ;;  %v448_v25 = vmul.f32 %v1119_v9, %v1406_v55  ;;  %v289_v33 = vsel %vm288_vm7, %v1410_v57, %v287_v15 }
  0xb0   : > { %1130 = vrsqrt.f32 %v1421_v61  ;;  %v292_v48 = vsel %vm290_vm8, %v291_v30, %v289_v33  ;;  %v333_v33 = vand.u32 2147483648, %v1429_v2 }
  0xb1   : > { %v1431_v5 = vpop.xlane.xlu1 %246  ;;  %v1442_v21 = vpop.xlane.xlu0 %255  ;;  %v450_v44 = vsel %vm449_vm3, %v1406_v55, %v448_v25  ;;  %v386_v10 = vmax.f32 %v292_v48, 1e-12  ;;  %vm311_vm3 = vcmp.eq.f32.partialorder %v1425_v63, 0.0 }
  0xb2   : > { %1132 = vrsqrt.f32 %v1431_v5  ;;  %v453_v62 = vsel %vm451_vm4, %v452_v18, %v450_v44  ;;  %vm330_vm4 = vcmp.eq.f32.partialorder %v1429_v2, inf  ;;  %vm325_vm8 = vcmp.eq.f32.partialorder %v1431_v5, 0.0 }
  0xb3   : > { %v455_v18 = vmax.f32 %v453_v62, 1e-12 }
  0xb4   : > { %v1121_v11 = vpop.eup %1120 }
  0xb5   : > { %v1123_v16 = vpop.eup %1122  ;;  %v294_v20 = vmul.f32 %v1121_v11, %v1418_v60  ;;  %v1444_v24 = vpop.xlane.xlu1 %252 }
  0xb6   : > { %1134 = vrsqrt.f32 %v1444_v24  ;;  %v1125_v26 = vpop.eup %1124  ;;  %v273_v32 = vmul.f32 %v1123_v16, %v1408_v56  ;;  %v1476_v51 = vpop.xlane.xlu0 %261  ;;  %vm337_vm7 = vcmp.eq.f32.partialorder %v1444_v24, inf }
  0xb7   : > { %1136 = vrsqrt.f32 %v1429_v2  ;;  %v296_v38 = vsel %vm295_vm11, %v1418_v60, %v294_v20  ;;  %v280_v45 = vmul.f32 %v1125_v26, %v1412_v58  ;;  %v319_v60 = vand.u32 2147483648, %v1421_v61 }
  0xb8   : > { %v1127_v31 = vpop.eup %1126  ;;  %v275_v52 = vsel %vm274_vm5, %v1408_v56, %v273_v32  ;;  %v299_v54 = vsel %vm297_vm14, %v298_v47, %v296_v38  ;;  %1138 = vrsqrt.f32 %v1442_v21  ;;  %vm332_vm5 = vcmp.eq.f32.partialorder %v1429_v2, 0.0 }
  0xb9   : > { %v1129_v36 = vpop.eup %1128  ;;  %v308_v39 = vmul.f32 %v1127_v31, %v1425_v63  ;;  %v1463_v42 = vpop.xlane.xlu1 %258  ;;  %v282_v11 = vsel %vm281_vm9, %v1412_v58, %v280_v45  ;;  %v278_v55 = vsel %vm276_vm6, %v277_v19, %v275_v52  ;;  %v387_v15 = vmax.f32 %v299_v54, 1e-12 }
  0xba   : > { %v301_v53 = vmul.f32 %v1129_v36, %v1414_v59  ;;  %v1131_v57 = vpop.eup %1130  ;;  %1140 = vrsqrt.f32 %v1463_v42  ;;  %v285_v56 = vsel %vm283_vm10, %v284_v37, %v282_v11  ;;  %v384_v30 = vmax.f32 %v278_v55, 1e-12 }
  0xbb   : > { %v310_v3 = vsel %vm309_vm15, %v1425_v63, %v308_v39  ;;  %1142 = vrcp.f32 %v454_v43  ;;  %v315_v19 = vmul.f32 %v1131_v57, %v1421_v61  ;;  %v1508_v63 = vpop.xlane.xlu0 %267  ;;  %v385_v37 = vmax.f32 %v285_v56, 1e-12 }
  0xbc   : > { %v1133_v9 = vpop.eup %1132  ;;  %1144 = vrsqrt.f32 %v1476_v51  ;;  %v303_v20 = vsel %vm302_vm12, %v1414_v59, %v301_v53  ;;  %v313_v25 = vsel %vm311_vm3, %v312_v13, %v310_v3  ;;  %vm323_vm6 = vcmp.eq.f32.partialorder %v1431_v5, inf }
  0xbd   : > { %v1489_v4 = vpop.xlane.xlu1 %264  ;;  %v322_v27 = vmul.f32 %v1133_v9, %v1431_v5  ;;  %v306_v32 = vsel %vm304_vm13, %v305_v49, %v303_v20  ;;  %v389_v58 = vmax.f32 %v313_v25, 1e-12  ;;  %v317_v39 = vsel %vm316_vm1, %v1421_v61, %v315_v19 }
  0xbe   : > { %1146 = vrsqrt.f32 %v1489_v4  ;;  %v388_v44 = vmax.f32 %v306_v32, 1e-12  ;;  %v326_v45 = vand.u32 2147483648, %v1431_v5  ;;  %vm339_vm9 = vcmp.eq.f32.partialorder %v1444_v24, 0.0 }
  0xbf   : > { %1148 = vrcp.f32 %v386_v10  ;;  %v324_v59 = vsel %vm323_vm6, %v1431_v5, %v322_v27  ;;  %v340_v49 = vand.u32 2147483648, %v1444_v24  ;;  %v320_v53 = vsel %vm318_vm2, %v319_v60, %v317_v39 }
  0xc0   : > { %v1135_v16 = vpop.eup %1134  ;;  %1150 = vrcp.f32 %v387_v15  ;;  %v327_v57 = vsel %vm325_vm8, %v326_v45, %v324_v59  ;;  %vm344_vm10 = vcmp.eq.f32.partialorder %v1442_v21, inf  ;;  %vm346_vm11 = vcmp.eq.f32.partialorder %v1442_v21, 0.0 }
  0xc1   : > { %v1137_v26 = vpop.eup %1136  ;;  %v336_v31 = vmul.f32 %v1135_v16, %v1444_v24  ;;  %v1516_v36 = vpop.xlane.xlu1 %270  ;;  %1152 = vrsqrt.f32 %v1508_v63  ;;  %v347_v61 = vand.u32 2147483648, %v1442_v21  ;;  %v390_v9 = vmax.f32 %v320_v53, 1e-12 }
  0xc2   : > { %v329_v38 = vmul.f32 %v1137_v26, %v1429_v2  ;;  %1154 = vrcp.f32 %v455_v18  ;;  %v1139_v43 = vpop.eup %1138  ;;  %v391_v11 = vmax.f32 %v327_v57, 1e-12  ;;  %vm358_vm12 = vcmp.eq.f32.partialorder %v1476_v51, inf }
  0xc3   : > { %v338_v47 = vsel %vm337_vm7, %v1444_v24, %v336_v31  ;;  %1156 = vrsqrt.f32 %v1516_v36  ;;  %v343_v24 = vmul.f32 %v1139_v43, %v1442_v21  ;;  %vm351_vm13 = vcmp.eq.f32.partialorder %v1463_v42, inf }
  0xc4   : > { %v1141_v48 = vpop.eup %1140  ;;  %1158 = vrcp.f32 %v389_v58  ;;  %v331_v54 = vsel %vm330_vm4, %v1429_v2, %v329_v38  ;;  %v341_v3 = vsel %vm339_vm9, %v340_v49, %v338_v47  ;;  %vm360_vm14 = vcmp.eq.f32.partialorder %v1476_v51, 0.0 }
  0xc5   : > { %v1143_v52 = vpop.eup %1142  ;;  %1160 = vrcp.f32 %v384_v30  ;;  %v350_v5 = vmul.f32 %v1141_v48, %v1463_v42  ;;  %v334_v10 = vsel %vm332_vm5, %v333_v33, %v331_v54  ;;  %v393_v55 = vmax.f32 %v341_v3, 1e-12 }
  0xc6   : > { %v1145_v62 = vpop.eup %1144  ;;  %1162 = vrcp.f32 %v385_v37  ;;  %vm353_vm15 = vcmp.eq.f32.partialorder %v1463_v42, 0.0  ;;  %vm365_vm1 = vcmp.eq.f32.partialorder %v1489_v4, inf  ;;  %v392_v25 = vmax.f32 %v334_v10, 1e-12 }
  0xc7   : > { %1164 = vrcp.f32 %v388_v44  ;;  %v357_v15 = vmul.f32 %v1145_v62, %v1476_v51  ;;  %v352_v20 = vsel %vm351_vm13, %v1463_v42, %v350_v5  ;;  %v345_v26 = vsel %vm344_vm10, %v1442_v21, %v343_v24 }
  0xc8   : > { %v1147_v60 = vpop.eup %1146  ;;  %v354_v56 = vand.u32 2147483648, %v1463_v42  ;;  %1166 = vrcp.f32 %v391_v11  ;;  %vm367_vm2 = vcmp.eq.f32.partialorder %v1489_v4, 0.0  ;;  %v368_v30 = vand.u32 2147483648, %v1489_v4 }
  0xc9   : > { %v1149_v13 = vpop.eup %1148  ;;  %v364_v16 = vmul.f32 %v1147_v60, %v1489_v4  ;;  %v457_v31 = vmul.f32 %v1143_v52, %v1289_v0  ;;  %1168 = vrcp.f32 %v393_v55  ;;  %v359_v58 = vsel %vm358_vm12, %v1476_v51, %v357_v15 }
  0xca   : > { %v1151_v18 = vpop.eup %1150  ;;  %v355_v33 = vsel %vm353_vm15, %v354_v56, %v352_v20  ;;  %1170 = vrcp.f32 %v390_v9  ;;  %v361_v38 = vand.u32 2147483648, %v1476_v51  ;;  %vm379_vm3 = vcmp.eq.f32.partialorder %v1516_v36, inf }
  0xcb   : > { %v1153_v2 = vpop.eup %1152  ;;  %v366_v19 = vsel %vm365_vm1, %v1489_v4, %v364_v16  ;;  %1172 = vrcp.f32 %v392_v25  ;;  %v348_v4 = vsel %vm346_vm11, %v347_v61, %v345_v26  ;;  %v395_v48 = vmax.f32 %v355_v33, 1e-12 }
  0xcc   : > { %v1155_v27 = vpop.eup %1154  ;;  %v369_v39 = vsel %vm367_vm2, %v368_v30, %v366_v19  ;;  %v362_v47 = vsel %vm360_vm14, %v361_v38, %v359_v58  ;;  %v371_v49 = vmul.f32 %v1153_v2, %v1508_v63  ;;  %v407_v52 = vmul.f32 %v1151_v18, %v1331_v14 }
  0xcd   : > { %v1157_v32 = vpop.eup %1156  ;;  %v459_v37 = vmul.f32 %v1155_v27, %v1294_v1  ;;  %v397_v54 = vmax.f32 %v369_v39, 1e-12  ;;  %v394_v3 = vmax.f32 %v348_v4, 1e-12  ;;  %vm372_vm4 = vcmp.eq.f32.partialorder %v1508_v63, inf }
  0xce   : > { %v1159_v42 = vpop.eup %1158  ;;  %v378_v59 = vmul.f32 %v1157_v32, %v1516_v36  ;;  %v396_v24 = vmax.f32 %v362_v47, 1e-12  ;;  %v382_v14 = vand.u32 2147483648, %v1516_v36  ;;  %v405_v60 = vmul.f32 %v1149_v13, %v1314_v7 }
  0xcf   : > { %v1161_v43 = vpop.eup %1160  ;;  %v468_v44 = vpack.c.bf16 %v459_v37, %v457_v31  ;;  %v411_v5 = vmul.f32 %v1159_v42, %v1345_v22  ;;  %1174 = vrcp.f32 %v395_v48  ;;  %v373_v9 = vsel %vm372_vm4, %v1508_v63, %v371_v49 }
  0xd0   : > { %v1163_v45 = vpop.eup %1162  ;;  %v401_v21 = vmul.f32 %v1161_v43, %v1311_v6  ;;  %v380_v51 = vsel %vm379_vm3, %v1516_v36, %v378_v59  ;;  %vm381_vm5 = vcmp.eq.f32.partialorder %v1516_v36, 0.0  ;;  %1176 = vrcp.f32 %v397_v54 }
  0xd1   : > { %v1165_v53 = vpop.eup %1164  ;;  %1105 = vmatprep.subr.msk.bf16.mxu0 %vm223_vm0, %v468_v44  ;;  %v494_v57 = vsel %vm223_vm0, %v468_v44, 0  ;;  %v403_v62 = vmul.f32 %v1163_v45, %v1317_v8  ;;  %v375_v8 = vand.u32 2147483648, %v1508_v63  ;;  %v383_v10 = vsel %vm381_vm5, %v382_v14, %v380_v51 }
  0xd2   : > { %1070 = vmatpush3.bf16.xpose.msra.mxu0 %v494_v57  ;;  %v409_v6 = vmul.f32 %v1165_v53, %v1326_v12  ;;  %v461_v22 = vpack.c.bf16 %v407_v52, %v405_v60  ;;  %v1167_v11 = vpop.eup %1166  ;;  %1178 = vrcp.f32 %v394_v3  ;;  %vm374_vm6 = vcmp.eq.f32.partialorder %v1508_v63, 0.0 }
  0xd3   : > { %v460_v61 = vpack.c.bf16 %v403_v62, %v401_v21  ;;  %v1169_v7 = vpop.eup %1168  ;;  %1180 = vrcp.f32 %v396_v24  ;;  %v376_v13 = vsel %vm374_vm6, %v375_v8, %v373_v9  ;;  %v399_v16 = vmax.f32 %v383_v10, 1e-12 }
  0xd4   : > { %v462_v55 = vpack.c.bf16 %v411_v5, %v409_v6  ;;  %v1171_v15 = vpop.eup %1170  ;;  %v415_v12 = vmul.f32 %v1167_v11, %v1357_v28  ;;  %v398_v18 = vmax.f32 %v376_v13, 1e-12  ;;  %v419_v20 = vmul.f32 %v1169_v7, %v1369_v34 }
  0xd5   : > { %1071 = vmatprep.mubr.msk.bf16.mxu0 %vm223_vm0, %v460_v61  ;;  %v1173_v36 = vpop.eup %1172  ;;  %v413_v2 = vmul.f32 %v1171_v15, %v1336_v17  ;;  %1182 = vrcp.f32 %v399_v16  ;;  %vm593_vm7 = vcmask 130048  }
  0xd6   : > { %v417_v63 = vmul.f32 %v1173_v36, %v1348_v23  ;;  %1184 = vrcp.f32 %v398_v18 }
  0xd7   : > { %v463_v25 = vpack.c.bf16 %v415_v12, %v413_v2 }
  0xd8   : > { %v464_v56 = vpack.c.bf16 %v419_v20, %v417_v63 }
  0xd9   : > { %1072 = vmatmul.mubr.msk.bf16.vlgmr.msra.gmra.mrb[0].mxu0 %vm223_vm0, %v461_v22  ;;  %v1175_v26 = vpop.eup %1174 }
  0xda   : > { %1075 = vmatprep.mubr.msk.bf16.mxu0 %vm223_vm0, %v462_v55  ;;  %v1177_v19 = vpop.eup %1176  ;;  %v423_v28 = vmul.f32 %v1175_v26, %v1381_v40 }
  0xdb   : > { %v427_v34 = vmul.f32 %v1177_v19, %v1393_v46 }
  0xdc   : > { %v1179_v27 = vpop.eup %1178 }
  0xdd   : > { %v1181_v30 = vpop.eup %1180  ;;  %v421_v17 = vmul.f32 %v1179_v27, %v1360_v29 }
  0xde   : > { %v425_v23 = vmul.f32 %v1181_v30, %v1372_v35 }
  0xdf   : > { %v465_v31 = vpack.c.bf16 %v423_v28, %v421_v17  ;;  %v1183_v32 = vpop.eup %1182 }
  0xe0   : > { %v466_v58 = vpack.c.bf16 %v427_v34, %v425_v23  ;;  %v1185_v33 = vpop.eup %1184  ;;  %v431_v37 = vmul.f32 %v1183_v32, %v1400_v50 }
  0xe1   : > { %1076 = vmatmul.mubr.msk.bf16.gmra.mrb[4].mxu0 %vm223_vm0, %v463_v25  ;;  %v429_v40 = vmul.f32 %v1185_v33, %v1384_v41 }
  0xe2   : > { %1079 = vmatprep.mubr.msk.bf16.mxu0 %vm223_vm0, %v464_v56 }
  0xe3   : > { %v467_v42 = vpack.c.bf16 %v431_v37, %v429_v40 }
  0xe9   : > { %1080 = vmatmul.mubr.msk.bf16.gmra.mrb[8].mxu0 %vm223_vm0, %v465_v31 }
  0xea   : > { %1083 = vmatprep.mubr.msk.bf16.mxu0 %vm223_vm0, %v466_v58 }
  0xf1   : > { %1084 = vmatmul.mubr.msk.bf16.gmra.mrb[12].mxu0 %vm223_vm0, %v467_v42 }
 0x1ac   : > { %v1611_v29 = vpop.f32.mrb[0].mxu0 }
 0x1ad   : > { %918 = vst.msk [vmem:[%s1609_s25 + $0x10] sm:$0xff] %vm593_vm7, %v1611_v29  ;;  %v1616_v35 = vpop.f32.mrb[1].mxu0  ;;  %v600_v39 = vsel %vm593_vm7, %v1611_v29, -inf }
 0x1ae   : > { %916 = vst.msk [vmem:[%s1609_s25] sm:$0xff] %vm593_vm7, %v1616_v35  ;;  %v1621_v41 = vpop.f32.mrb[2].mxu0  ;;  %v594_v46 = vsel %vm593_vm7, %v1616_v35, -inf }
 0x1af   : > { %919 = vst.msk [vmem:[%s1609_s25 + $0x18] sm:$0xff] %vm593_vm7, %v1621_v41  ;;  %595 = vmax.xlane.f32.xlu0 %v594_v46  ;;  %v1628_v50 = vpop.f32.mrb[3].mxu0  ;;  %v603_v43 = vsel %vm593_vm7, %v1621_v41, -inf }
 0x1b0   : > { %917 = vst.msk [vmem:[%s1609_s25 + $0x8] sm:$0xff] %vm593_vm7, %v1628_v50  ;;  %v597_v38 = vsel %vm593_vm7, %v1628_v50, -inf }
 0x1b1   : > { %598 = vmax.xlane.f32.xlu1 %v597_v38 }
 0x1b3   : > { %601 = vmax.xlane.f32.xlu0 %v600_v39 }
 0x1b4   : > { %v1637_v59 = vpop.f32.mrb[4].mxu0 }
 0x1b5   : > { %922 = vst.msk [vmem:[%s1609_s25 + $0x30] sm:$0xff] %vm593_vm7, %v1637_v59  ;;  %604 = vmax.xlane.f32.xlu1 %v603_v43  ;;  %v1644_v4 = vpop.f32.mrb[5].mxu0  ;;  %v612_v49 = vsel %vm593_vm7, %v1637_v59, -inf }
 0x1b6   : > { %920 = vst.msk [vmem:[%s1609_s25 + $0x20] sm:$0xff] %vm593_vm7, %v1644_v4  ;;  %v1649_v44 = vpop.f32.mrb[6].mxu0  ;;  %v606_v45 = vsel %vm593_vm7, %v1644_v4, -inf }
 0x1b7   : > { %923 = vst.msk [vmem:[%s1609_s25 + $0x38] sm:$0xff] %vm593_vm7, %v1649_v44  ;;  %607 = vmax.xlane.f32.xlu0 %v606_v45  ;;  %v1656_v47 = vpop.f32.mrb[7].mxu0  ;;  %v615_v53 = vsel %vm593_vm7, %v1649_v44, -inf }
 0x1b8   : > { %921 = vst.msk [vmem:[%s1609_s25 + $0x28] sm:$0xff] %vm593_vm7, %v1656_v47  ;;  %v609_v48 = vsel %vm593_vm7, %v1656_v47, -inf }
 0x1b9   : > { %610 = vmax.xlane.f32.xlu1 %v609_v48 }
 0x1bb   : > { %613 = vmax.xlane.f32.xlu0 %v612_v49 }
 0x1bc   : > { %v1665_v52 = vpop.f32.mrb[8].mxu0 }
 0x1bd   : > { %926 = vst.msk [vmem:[%s1609_s25 + $0x50] sm:$0xff] %vm593_vm7, %v1665_v52  ;;  %616 = vmax.xlane.f32.xlu1 %v615_v53  ;;  %v1672_v54 = vpop.f32.mrb[9].mxu0  ;;  %v624_v51 = vsel %vm593_vm7, %v1665_v52, -inf }
 0x1be   : > { %924 = vst.msk [vmem:[%s1609_s25 + $0x40] sm:$0xff] %vm593_vm7, %v1672_v54  ;;  %v1677_v57 = vpop.f32.mrb[10].mxu0  ;;  %v618_v21 = vsel %vm593_vm7, %v1672_v54, -inf }
 0x1bf   : > { %927 = vst.msk [vmem:[%s1609_s25 + $0x58] sm:$0xff] %vm593_vm7, %v1677_v57  ;;  %619 = vmax.xlane.f32.xlu0 %v618_v21  ;;  %v1684_v62 = vpop.f32.mrb[11].mxu0  ;;  %v627_v24 = vsel %vm593_vm7, %v1677_v57, -inf }
 0x1c0   : > { %925 = vst.msk [vmem:[%s1609_s25 + $0x48] sm:$0xff] %vm593_vm7, %v1684_v62  ;;  %v621_v3 = vsel %vm593_vm7, %v1684_v62, -inf }
 0x1c1   : > { %622 = vmax.xlane.f32.xlu1 %v621_v3 }
 0x1c3   : > { %625 = vmax.xlane.f32.xlu0 %v624_v51 }
 0x1c4   : > { %v1693_v5 = vpop.f32.mrb[12].mxu0 }
 0x1c5   : > { %930 = vst.msk [vmem:[%s1609_s25 + $0x70] sm:$0xff] %vm593_vm7, %v1693_v5  ;;  %628 = vmax.xlane.f32.xlu1 %v627_v24  ;;  %v1700_v14 = vpop.f32.mrb[13].mxu0  ;;  %v636_v8 = vsel %vm593_vm7, %v1693_v5, -inf }
 0x1c6   : > { %928 = vst.msk [vmem:[%s1609_s25 + $0x60] sm:$0xff] %vm593_vm7, %v1700_v14  ;;  %v1705_v61 = vpop.f32.mrb[14].mxu0  ;;  %v630_v60 = vsel %vm593_vm7, %v1700_v14, -inf }
 0x1c7   : > { %931 = vst.msk [vmem:[%s1609_s25 + $0x78] sm:$0xff] %vm593_vm7, %v1705_v61  ;;  %631 = vmax.xlane.f32.xlu0 %v630_v60  ;;  %v1712_v9 = vpop.f32.mrb[15].mxu0  ;;  %v639_v10 = vsel %vm593_vm7, %v1705_v61, -inf }
 0x1c8   : > { %929 = vst.msk [vmem:[%s1609_s25 + $0x68] sm:$0xff] %vm593_vm7, %v1712_v9  ;;  %v633_v6 = vsel %vm593_vm7, %v1712_v9, -inf }
 0x1c9   : > { %634 = vmax.xlane.f32.xlu1 %v633_v6 }
 0x1cb   : > { %637 = vmax.xlane.f32.xlu0 %v636_v8 }
 0x1cd   : > { %640 = vmax.xlane.f32.xlu1 %v639_v10 }
 0x23c   : > { %v596_v22 = vpop.xlane.xlu0 %595 }
 0x23d   : > { %v642_v11 = vsub.f32 %v1616_v35, %v596_v22 }
 0x23e   : > { %v599_v55 = vpop.xlane.xlu1 %598 }
 0x23f   : > { %v658_v7 = vmul.f32 1.442695, %v642_v11  ;;  %v643_v13 = vsub.f32 %v1628_v50, %v599_v55 }
 0x240   : > { %v602_v15 = vpop.xlane.xlu0 %601 }
 0x241   : > { %1186 = vpow2.f32 %v658_v7  ;;  %v660_v16 = vmul.f32 1.442695, %v643_v13  ;;  %v644_v36 = vsub.f32 %v1611_v29, %v602_v15 }
 0x242   : > { %v605_v12 = vpop.xlane.xlu1 %604 }
 0x243   : > { %1188 = vpow2.f32 %v660_v16  ;;  %v662_v18 = vmul.f32 1.442695, %v644_v36  ;;  %v645_v20 = vsub.f32 %v1621_v41, %v605_v12 }
 0x244   : > { %v608_v2 = vpop.xlane.xlu0 %607 }
 0x245   : > { %1190 = vpow2.f32 %v662_v18  ;;  %v664_v63 = vmul.f32 1.442695, %v645_v20  ;;  %v646_v25 = vsub.f32 %v1644_v4, %v608_v2 }
 0x246   : > { %v611_v26 = vpop.xlane.xlu1 %610 }
 0x247   : > { %1192 = vpow2.f32 %v664_v63  ;;  %v666_v56 = vmul.f32 1.442695, %v646_v25  ;;  %v647_v19 = vsub.f32 %v1656_v47, %v611_v26 }
 0x248   : > { %v614_v27 = vpop.xlane.xlu0 %613 }
 0x249   : > { %1194 = vpow2.f32 %v666_v56  ;;  %v668_v30 = vmul.f32 1.442695, %v647_v19  ;;  %v648_v28 = vsub.f32 %v1637_v59, %v614_v27 }
 0x24a   : > { %v617_v34 = vpop.xlane.xlu1 %616 }
 0x24b   : > { %v1730_v17 = vpop.eup %1186  ;;  %1196 = vpow2.f32 %v668_v30  ;;  %v670_v23 = vmul.f32 1.442695, %v648_v28  ;;  %v649_v31 = vsub.f32 %v1649_v44, %v617_v34  ;;  %v778_v30 = vpack.c.bf16 %v1294_v1, %v1289_v0 }
 0x24c   : > { %v620_v32 = vpop.xlane.xlu0 %619  ;;  %v690_v58 = vsel %vm593_vm7, %v1730_v17, 0.0 }
 0x24d   : > { %v1735_v33 = vpop.eup %1188  ;;  %1198 = vpow2.f32 %v670_v23  ;;  %v672_v37 = vmul.f32 1.442695, %v649_v31  ;;  %v650_v40 = vsub.f32 %v1672_v54, %v620_v32  ;;  %691 = vadd.xlane.f32.xlu0 %v690_v58  ;;  %1087 = vmatprep.subr.bf16.mxu1 %v778_v30 }
 0x24e   : > { %v623_v42 = vpop.xlane.xlu1 %622  ;;  %v693_v29 = vsel %vm593_vm7, %v1735_v33, 0.0  ;;  %1088 = vmatpush3.bf16.msra.mxu1 %v778_v30 }
 0x24f   : > { %v1740_v35 = vpop.eup %1190  ;;  %1200 = vpow2.f32 %v672_v37  ;;  %v674_v41 = vmul.f32 1.442695, %v650_v40  ;;  %v651_v46 = vsub.f32 %v1684_v62, %v623_v42  ;;  %694 = vadd.xlane.f32.xlu1 %v693_v29 }
 0x250   : > { %v626_v50 = vpop.xlane.xlu0 %625  ;;  %v696_v38 = vsel %vm593_vm7, %v1740_v35, 0.0 }
 0x251   : > { %v1745_v39 = vpop.eup %1192  ;;  %1202 = vpow2.f32 %v674_v41  ;;  %v676_v59 = vmul.f32 1.442695, %v651_v46  ;;  %v652_v43 = vsub.f32 %v1665_v52, %v626_v50  ;;  %697 = vadd.xlane.f32.xlu0 %v696_v38 }
 0x252   : > { %v629_v4 = vpop.xlane.xlu1 %628  ;;  %v699_v44 = vsel %vm593_vm7, %v1745_v39, 0.0 }
 0x253   : > { %v1750_v45 = vpop.eup %1194  ;;  %1204 = vpow2.f32 %v676_v59  ;;  %v678_v47 = vmul.f32 1.442695, %v652_v43  ;;  %v653_v48 = vsub.f32 %v1677_v57, %v629_v4  ;;  %700 = vadd.xlane.f32.xlu1 %v699_v44 }
 0x254   : > { %v632_v49 = vpop.xlane.xlu0 %631  ;;  %v702_v53 = vsel %vm593_vm7, %v1750_v45, 0.0 }
 0x255   : > { %v1755_v54 = vpop.eup %1196  ;;  %1206 = vpow2.f32 %v678_v47  ;;  %v680_v52 = vmul.f32 1.442695, %v653_v48  ;;  %v654_v21 = vsub.f32 %v1700_v14, %v632_v49  ;;  %703 = vadd.xlane.f32.xlu0 %v702_v53 }
 0x256   : > { %v635_v62 = vpop.xlane.xlu1 %634  ;;  %v705_v3 = vsel %vm593_vm7, %v1755_v54, 0.0 }
 0x257   : > { %v1760_v51 = vpop.eup %1198  ;;  %1208 = vpow2.f32 %v680_v52  ;;  %v682_v57 = vmul.f32 1.442695, %v654_v21  ;;  %v655_v24 = vsub.f32 %v1712_v9, %v635_v62  ;;  %706 = vadd.xlane.f32.xlu1 %v705_v3 }
 0x258   : > { %v638_v60 = vpop.xlane.xlu0 %637  ;;  %v708_v6 = vsel %vm593_vm7, %v1760_v51, 0.0 }
 0x259   : > { %v1765_v8 = vpop.eup %1200  ;;  %1210 = vpow2.f32 %v682_v57  ;;  %v684_v14 = vmul.f32 1.442695, %v655_v24  ;;  %v656_v10 = vsub.f32 %v1693_v5, %v638_v60  ;;  %709 = vadd.xlane.f32.xlu0 %v708_v6 }
 0x25a   : > { %v641_v22 = vpop.xlane.xlu1 %640  ;;  %v711_v11 = vsel %vm593_vm7, %v1765_v8, 0.0 }
 0x25b   : > { %v1770_v55 = vpop.eup %1202  ;;  %1212 = vpow2.f32 %v684_v14  ;;  %v686_v9 = vmul.f32 1.442695, %v656_v10  ;;  %v657_v7 = vsub.f32 %v1705_v61, %v641_v22  ;;  %712 = vadd.xlane.f32.xlu1 %v711_v11 }
 0x25c   : > { %v714_v13 = vsel %vm593_vm7, %v1770_v55, 0.0 }
 0x25d   : > { %v1775_v15 = vpop.eup %1204  ;;  %1214 = vpow2.f32 %v686_v9  ;;  %v688_v16 = vmul.f32 1.442695, %v657_v7  ;;  %715 = vadd.xlane.f32.xlu0 %v714_v13 }
 0x25e   : > { %v717_v5 = vsel %vm593_vm7, %v1775_v15, 0.0 }
 0x25f   : > { %v1779_v36 = vpop.eup %1206  ;;  %1216 = vpow2.f32 %v688_v16  ;;  %718 = vadd.xlane.f32.xlu1 %v717_v5 }
 0x260   : > { %v720_v12 = vsel %vm593_vm7, %v1779_v36, 0.0 }
 0x261   : > { %v1783_v61 = vpop.eup %1208  ;;  %721 = vadd.xlane.f32.xlu0 %v720_v12 }
 0x262   : > { %v723_v18 = vsel %vm593_vm7, %v1783_v61, 0.0 }
 0x263   : > { %v1787_v20 = vpop.eup %1210  ;;  %724 = vadd.xlane.f32.xlu1 %v723_v18 }
 0x264   : > { %v726_v2 = vsel %vm593_vm7, %v1787_v20, 0.0 }
 0x265   : > { %v1791_v63 = vpop.eup %1212  ;;  %727 = vadd.xlane.f32.xlu0 %v726_v2 }
 0x266   : > { %v729_v25 = vsel %vm593_vm7, %v1791_v63, 0.0 }
 0x267   : > { %v1795_v26 = vpop.eup %1214  ;;  %730 = vadd.xlane.f32.xlu1 %v729_v25 }
 0x268   : > { %v732_v56 = vsel %vm593_vm7, %v1795_v26, 0.0 }
 0x269   : > { %v1799_v19 = vpop.eup %1216  ;;  %733 = vadd.xlane.f32.xlu0 %v732_v56 }
 0x26a   : > { %v735_v27 = vsel %vm593_vm7, %v1799_v19, 0.0 }
 0x26b   : > { %736 = vadd.xlane.f32.xlu1 %v735_v27 }
 0x2da   : > { %v692_v28 = vpop.xlane.xlu0 %691 }
 0x2db   : > { %1218 = vrcp.f32 %v692_v28 }
 0x2dc   : > { %v695_v34 = vpop.xlane.xlu1 %694 }
 0x2dd   : > { %1220 = vrcp.f32 %v695_v34 }
 0x2de   : > { %v698_v23 = vpop.xlane.xlu0 %697 }
 0x2df   : > { %1222 = vrcp.f32 %v698_v23 }
 0x2e0   : > { %v701_v31 = vpop.xlane.xlu1 %700 }
 0x2e1   : > { %1224 = vrcp.f32 %v701_v31 }
 0x2e2   : > { %v704_v32 = vpop.xlane.xlu0 %703 }
 0x2e3   : > { %1226 = vrcp.f32 %v704_v32 }
 0x2e4   : > { %v707_v58 = vpop.xlane.xlu1 %706 }
 0x2e5   : > { %v1219_v37 = vpop.eup %1218  ;;  %1228 = vrcp.f32 %v707_v58 }
 0x2e6   : > { %v710_v40 = vpop.xlane.xlu0 %709  ;;  %v754_v0 = vmul.f32 %v1219_v37, %v1730_v17 }
 0x2e7   : > { %v1221_v42 = vpop.eup %1220  ;;  %1230 = vrcp.f32 %v710_v40 }
 0x2e8   : > { %v713_v29 = vpop.xlane.xlu1 %712  ;;  %v755_v1 = vmul.f32 %v1221_v42, %v1735_v33 }
 0x2e9   : > { %v1223_v41 = vpop.eup %1222  ;;  %1232 = vrcp.f32 %v713_v29 }
 0x2ea   : > { %v716_v46 = vpop.xlane.xlu0 %715  ;;  %v770_v50 = vpack.c.bf16 %v755_v1, %v754_v0  ;;  %v756_v43 = vmul.f32 %v1223_v41, %v1740_v35 }
 0x2eb   : > { %v1225_v38 = vpop.eup %1224  ;;  %1234 = vrcp.f32 %v716_v46 }
 0x2ec   : > { %1089 = vmatprep.mubr.msk.bf16.mxu1 %vm593_vm7, %v770_v50  ;;  %v719_v59 = vpop.xlane.xlu1 %718  ;;  %v757_v4 = vmul.f32 %v1225_v38, %v1745_v39 }
 0x2ed   : > { %v1227_v44 = vpop.eup %1226  ;;  %1236 = vrcp.f32 %v719_v59 }
 0x2ee   : > { %v722_v47 = vpop.xlane.xlu0 %721  ;;  %v771_v48 = vpack.c.bf16 %v757_v4, %v756_v43  ;;  %v758_v49 = vmul.f32 %v1227_v44, %v1750_v45 }
 0x2ef   : > { %v1229_v17 = vpop.eup %1228  ;;  %1238 = vrcp.f32 %v722_v47 }
 0x2f0   : > { %1090 = vmatmul.mubr.msk.bf16.vlgmr.msra.gmra.mrb[0].mxu1 %vm593_vm7, %v771_v48  ;;  %v725_v33 = vpop.xlane.xlu1 %724  ;;  %v759_v53 = vmul.f32 %v1229_v17, %v1755_v54 }
 0x2f1   : > { %v1231_v52 = vpop.eup %1230  ;;  %1240 = vrcp.f32 %v725_v33 }
 0x2f2   : > { %v728_v21 = vpop.xlane.xlu0 %727  ;;  %v772_v62 = vpack.c.bf16 %v759_v53, %v758_v49  ;;  %v760_v3 = vmul.f32 %v1231_v52, %v1760_v51 }
 0x2f3   : > { %v1233_v35 = vpop.eup %1232  ;;  %1242 = vrcp.f32 %v728_v21 }
 0x2f4   : > { %1093 = vmatprep.mubr.msk.bf16.mxu1 %vm593_vm7, %v772_v62  ;;  %v731_v39 = vpop.xlane.xlu1 %730  ;;  %v761_v57 = vmul.f32 %v1233_v35, %v1765_v8 }
 0x2f5   : > { %v1235_v24 = vpop.eup %1234  ;;  %1244 = vrcp.f32 %v731_v39 }
 0x2f6   : > { %v734_v60 = vpop.xlane.xlu0 %733  ;;  %v773_v6 = vpack.c.bf16 %v761_v57, %v760_v3  ;;  %v762_v14 = vmul.f32 %v1235_v24, %v1770_v55 }
 0x2f7   : > { %v1237_v45 = vpop.eup %1236  ;;  %1246 = vrcp.f32 %v734_v60 }
 0x2f8   : > { %1094 = vmatmul.mubr.msk.bf16.gmra.mrb[4].mxu1 %vm593_vm7, %v773_v6  ;;  %v737_v54 = vpop.xlane.xlu1 %736  ;;  %v763_v10 = vmul.f32 %v1237_v45, %v1775_v15 }
 0x2f9   : > { %v1239_v22 = vpop.eup %1238  ;;  %1248 = vrcp.f32 %v737_v54 }
 0x2fa   : > { %v774_v11 = vpack.c.bf16 %v763_v10, %v762_v14  ;;  %v764_v51 = vmul.f32 %v1239_v22, %v1779_v36 }
 0x2fb   : > { %v1241_v9 = vpop.eup %1240 }
 0x2fc   : > { %1097 = vmatprep.mubr.msk.bf16.mxu1 %vm593_vm7, %v774_v11  ;;  %v765_v8 = vmul.f32 %v1241_v9, %v1783_v61 }
 0x2fd   : > { %v1243_v7 = vpop.eup %1242 }
 0x2fe   : > { %v775_v13 = vpack.c.bf16 %v765_v8, %v764_v51  ;;  %v766_v55 = vmul.f32 %v1243_v7, %v1787_v20 }
 0x2ff   : > { %v1245_v16 = vpop.eup %1244 }
 0x300   : > { %1098 = vmatmul.mubr.msk.bf16.gmra.mrb[8].mxu1 %vm593_vm7, %v775_v13  ;;  %v767_v15 = vmul.f32 %v1245_v16, %v1791_v63 }
 0x301   : > { %v1247_v5 = vpop.eup %1246 }
 0x302   : > { %v776_v12 = vpack.c.bf16 %v767_v15, %v766_v55  ;;  %v768_v2 = vmul.f32 %v1247_v5, %v1795_v26 }
 0x303   : > { %v1249_v18 = vpop.eup %1248 }
 0x304   : > { %1101 = vmatprep.mubr.msk.bf16.mxu1 %vm593_vm7, %v776_v12  ;;  %v769_v36 = vmul.f32 %v1249_v18, %v1799_v19 }
 0x306   : > { %v777_v25 = vpack.c.bf16 %v769_v36, %v768_v2 }
 0x308   : > { %1102 = vmatmul.mubr.msk.bf16.gmra.mrb[12].mxu1 %vm593_vm7, %v777_v25 }
 0x3c3   : > { %v1091_v61 = vpop.f32.mrb[0].mxu1 }
 0x3c4   : > { %902 = vst.msk [vmem:[%s1833_s28 + $0x10] sm:$0xff] %vm223_vm0, %v1091_v61  ;;  %v837_v20 = vpop.f32.mrb[1].mxu1 }
 0x3c5   : > { %900 = vst.msk [vmem:[%s1833_s28] sm:$0xff] %vm223_vm0, %v837_v20  ;;  %v1092_v63 = vpop.f32.mrb[2].mxu1 }
 0x3c6   : > { %903 = vst.msk [vmem:[%s1833_s28 + $0x18] sm:$0xff] %vm223_vm0, %v1092_v63  ;;  %v840_v26 = vpop.f32.mrb[3].mxu1 }
 0x3c7   : > { %901 = vst.msk [vmem:[%s1833_s28 + $0x8] sm:$0xff] %vm223_vm0, %v840_v26 }
 0x3cb   : > { %v1095_v56 = vpop.f32.mrb[4].mxu1 }
 0x3cc   : > { %906 = vst.msk [vmem:[%s1833_s28 + $0x30] sm:$0xff] %vm223_vm0, %v1095_v56  ;;  %v853_v19 = vpop.f32.mrb[5].mxu1 }
 0x3cd   : > { %904 = vst.msk [vmem:[%s1833_s28 + $0x20] sm:$0xff] %vm223_vm0, %v853_v19  ;;  %v1096_v27 = vpop.f32.mrb[6].mxu1 }
 0x3ce   : > { %907 = vst.msk [vmem:[%s1833_s28 + $0x38] sm:$0xff] %vm223_vm0, %v1096_v27  ;;  %v856_v30 = vpop.f32.mrb[7].mxu1 }
 0x3cf   : > { %905 = vst.msk [vmem:[%s1833_s28 + $0x28] sm:$0xff] %vm223_vm0, %v856_v30 }
 0x3d3   : > { %v1099_v28 = vpop.f32.mrb[8].mxu1 }
 0x3d4   : > { %910 = vst.msk [vmem:[%s1833_s28 + $0x50] sm:$0xff] %vm223_vm0, %v1099_v28  ;;  %v869_v34 = vpop.f32.mrb[9].mxu1 }
 0x3d5   : > { %908 = vst.msk [vmem:[%s1833_s28 + $0x40] sm:$0xff] %vm223_vm0, %v869_v34  ;;  %v1100_v23 = vpop.f32.mrb[10].mxu1 }
 0x3d6   : > { %911 = vst.msk [vmem:[%s1833_s28 + $0x58] sm:$0xff] %vm223_vm0, %v1100_v23  ;;  %v872_v31 = vpop.f32.mrb[11].mxu1 }
 0x3d7   : > { %909 = vst.msk [vmem:[%s1833_s28 + $0x48] sm:$0xff] %vm223_vm0, %v872_v31 }
 0x3db   : > { %v1103_v32 = vpop.f32.mrb[12].mxu1 }
 0x3dc   : > { %914 = vst.msk [vmem:[%s1833_s28 + $0x70] sm:$0xff] %vm223_vm0, %v1103_v32  ;;  %v885_v58 = vpop.f32.mrb[13].mxu1 }
 0x3dd   : > { %912 = vst.msk [vmem:[%s1833_s28 + $0x60] sm:$0xff] %vm223_vm0, %v885_v58  ;;  %v1104_v37 = vpop.f32.mrb[14].mxu1 }
 0x3de   : > { %915 = vst.msk [vmem:[%s1833_s28 + $0x78] sm:$0xff] %vm223_vm0, %v1104_v37  ;;  %v888_v40 = vpop.f32.mrb[15].mxu1 }
 0x3df   : > { %913 = vst.msk [vmem:[%s1833_s28 + $0x68] sm:$0xff] %vm223_vm0, %v888_v40 }
 0x3e0 PF: > { %s14_s12 = sadd.s32 1, %s1256_s12  }
 0x3e1   : > { %p11_p4 = scmp.ge.s32.totalorder %s14_s12, 4  }
 0x3e3   :  { %13 = sbr.rel (!%p11_p4) target bundleno = 1 (0x1), region = 70 }

</bundles_post_ra>
